<compile_context>
chip_gen: v5e
topology: v5e:2x2
jax: 0.10.0
libtpu: 0.0.40
codegen_flags: <defaults>
</compile_context>

<pallas_src>
import jax
import jax.numpy as jnp
from jax import lax
from jax.experimental import pallas as pl
from jax.experimental.pallas import tpu as pltpu


# ----------------------------- kernel -----------------------------

def _linear_kernel(x_ref, w_ref, b_ref, o_ref):
    # x_ref: [tm, C]   w_ref: [tn, C]   b_ref: [1, tn] (f32)   o_ref: [tm, tn]
    # Single full-K step: contract on the shared C axis (trans_b form runs natively on the MXU),
    # accumulate in f32, add bias once, write straight to the output block.
    acc = lax.dot_general(
        x_ref[...], w_ref[...],
        dimension_numbers=(((1,), (1,)), ((), ())),
        preferred_element_type=jnp.float32,
    )
    o_ref[...] = (acc + b_ref[...]).astype(o_ref.dtype)


# ----------------------------- tiling plan -----------------------------

def _round_up(x, m):
    return ((x + m - 1) // m) * m


_VMEM_BUDGET = 24 * 1024 * 1024  # double-buffered blocks must fit; safe on v7x 32 MiB scoped VMEM


def _plan_tiles(Bp, C, N, x_bytes, w_bytes, out_bytes):
    """Pick (tm, tn) for a single-full-K kernel; return None if C is too large to fit VMEM."""
    # tm spans the whole (padded) batch when possible -> M grid of 1 -> W streamed exactly once.
    tm = min(Bp, 1024)
    # tn: full-N block for small class counts; otherwise 128-granular, capped at 256 so the
    # N grid has >=2 iterations for v7x megacore when N is large.
    if N <= 128:
        tn = N
    elif N <= 256:
        tn = 128
    else:
        tn = 256

    def vmem_need(tm_, tn_):
        # double-buffered x, W, bias(f32) blocks + double-buffered output block
        return 2 * (tm_ * C * x_bytes + tn_ * C * w_bytes + tn_ * 4 + tm_ * tn_ * out_bytes)

    while vmem_need(tm, tn) > _VMEM_BUDGET and tm > 8:
        tm = max(8, _round_up(tm // 2, 8))
    while vmem_need(tm, tn) > _VMEM_BUDGET and N > 128 and tn > 128:
        tn = max(128, _round_up(tn // 2, 128))
    if vmem_need(tm, tn) > _VMEM_BUDGET:
        return None
    return tm, tn, vmem_need(tm, tn)


# ----------------------------- wrapper -----------------------------

def prompt_learner_forward(x, head_weight, head_bias, *,
                           cast_to_bf16=False, min_flops_for_kernel=1_000_000):
    """x: [B, C]; head_weight: [N, C] (PyTorch layout); head_bias: [N]. Returns [B, N]."""
    B, C = x.shape
    N = head_weight.shape[0]
    out_dtype = x.dtype

    # Fast path: at tiny scale the pallas_call launch/DMA overhead dominates; XLA's fused dot wins.
    if 2 * B * C * N < min_flops_for_kernel:
        return (x @ head_weight.T + head_bias).astype(out_dtype)

    if cast_to_bf16:
        # Bandwidth-bound on the W stream: bf16 halves W bytes; accumulation stays f32 in-kernel.
        x = x.astype(jnp.bfloat16)
        head_weight = head_weight.astype(jnp.bfloat16)

    # Only x may need a tiny (<=7 rows) pad so the M block dim is 8-aligned; W is never padded.
    Bp = _round_up(B, 8)
    if Bp != B:
        x = jnp.pad(x, ((0, Bp - B), (0, 0)))

    plan = _plan_tiles(Bp, C, N, x.dtype.itemsize, head_weight.dtype.itemsize,
                       jnp.dtype(out_dtype).itemsize)
    if plan is None:
        # TODO(synk): for extremely large C a masked K-split (ragged last K tile) path is needed;
        # fall back to the XLA dot in that regime.
        out = (x.astype(jnp.float32) @ head_weight.astype(jnp.float32).T + head_bias)
        return out[:B].astype(out_dtype)
    tm, tn, vmem_bytes = plan

    b2d = head_bias.reshape(1, N).astype(jnp.float32)

    # W-tile index on the OUTER grid axis: W (the dominant HBM stream) is fetched exactly once
    # per N tile and held while the inner M loop re-streams the (much smaller) x.
    grid = (pl.cdiv(N, tn), pl.cdiv(Bp, tm))

    cost = pl.CostEstimate(
        flops=2 * B * C * N,
        transcendentals=0,
        bytes_accessed=(x.size * x.dtype.itemsize
                        + head_weight.size * head_weight.dtype.itemsize
                        + 4 * N
                        + Bp * N * jnp.dtype(out_dtype).itemsize),
    )

    out = pl.pallas_call(
        _linear_kernel,
        out_shape=jax.ShapeDtypeStruct((Bp, N), out_dtype),
        grid_spec=pltpu.PrefetchScalarGridSpec(
            num_scalar_prefetch=0,
            grid=grid,
            in_specs=[
                pl.BlockSpec((tm, C), lambda j, i: (i, 0)),   # x: K is one full-dim block
                pl.BlockSpec((tn, C), lambda j, i: (j, 0)),   # W: [N, C] layout, no transpose/pad
                pl.BlockSpec((1, tn), lambda j, i: (0, j)),   # bias (f32)
            ],
            out_specs=pl.BlockSpec((tm, tn), lambda j, i: (i, j)),
        ),
        compiler_params=pltpu.CompilerParams(
            dimension_semantics=("parallel", "parallel"),
            vmem_limit_bytes=min(max(int(1.25 * vmem_bytes), 4 * 1024 * 1024),
                                 32 * 1024 * 1024),
        ),
        cost_estimate=cost,
    )(x, head_weight, b2d)

    return out[:B] if Bp != B else out


# ----------------------------- param init (matches __init__) -----------------------------

def _trunc_normal(key, shape, std=0.02):
    # timm's trunc_normal_ default: truncate to [-2*std, 2*std]
    return std * jax.random.truncated_normal(key, -2.0, 2.0, shape, jnp.float32)


def init_prompt_learner_params(key, num_classes, prompt_length, prompt_depth, prompt_channels):
    k_tok, k_w, k_b = jax.random.split(key, 3)
    prompt_tokens = _trunc_normal(k_tok, (prompt_depth, prompt_length, prompt_channels))
    head_weight = _trunc_normal(k_w, (num_classes, prompt_channels))
    # PyTorch nn.Linear bias default: U(-1/sqrt(fan_in), 1/sqrt(fan_in))
    bound = 1.0 / jnp.sqrt(prompt_channels)
    head_bias = jax.random.uniform(k_b, (num_classes,), jnp.float32, -bound, bound)
    return {
        "Prompt_Tokens": prompt_tokens,   # unused in forward (matches reference)
        "head_weight": head_weight,
        "head_bias": head_bias,
    }


# ----------------------------- demo -----------------------------

if __name__ == "__main__":
    # Small shapes consistent with the module's forward: x: [batch, prompt_channels]
    num_classes = 16
    prompt_length = 8
    prompt_depth = 2
    prompt_channels = 32
    batch = 8

    key = jax.random.PRNGKey(0)
    k_params, k_x = jax.random.split(key)
    params = init_prompt_learner_params(
        k_params, num_classes, prompt_length, prompt_depth, prompt_channels
    )
    x = jax.random.normal(k_x, (batch, prompt_channels), jnp.float32)

    # Force the Pallas kernel even at demo scale (the default heuristic would take the XLA
    # fast path because the problem is ~8K FLOPs).
    out = prompt_learner_forward(x, params["head_weight"], params["head_bias"],
                                 min_flops_for_kernel=0)
    out = jax.block_until_ready(out)

    ref = jnp.dot(x, params["head_weight"].T,
                  precision=lax.Precision.HIGHEST) + params["head_bias"]
    assert out.shape == (batch, num_classes)
    assert jnp.allclose(out, ref, atol=1e-5, rtol=1e-5)

    # Larger, ragged shapes (B not multiple of 8, C not multiple of 128, N > 128 and ragged)
    # to exercise the no-pad / partial-block path.
    k1, k2, k3 = jax.random.split(jax.random.PRNGKey(1), 3)
    Bb, Cb, Nb = 300, 640, 200
    xb = jax.random.normal(k1, (Bb, Cb), jnp.float32)
    Wb = 0.02 * jax.random.normal(k2, (Nb, Cb), jnp.float32)
    bb = jax.random.uniform(k3, (Nb,), jnp.float32, -0.03, 0.03)

    outb = jax.block_until_ready(prompt_learner_forward(xb, Wb, bb, min_flops_for_kernel=0))
    refb = jnp.dot(xb, Wb.T, precision=lax.Precision.HIGHEST) + bb
    assert outb.shape == (Bb, Nb)
    assert jnp.allclose(outb, refb, atol=1e-4, rtol=1e-4)

    # bf16-weight bandwidth variant (f32 MXU accumulation) — looser tolerance expected.
    outc = jax.block_until_ready(
        prompt_learner_forward(xb, Wb, bb, cast_to_bf16=True, min_flops_for_kernel=0))
    assert jnp.allclose(outc, refb, atol=5e-2, rtol=5e-2)

    print("KERNEL_OK")
</pallas_src>

<mosaic_0001>
module attributes {stable_mosaic.version = 11 : i64} {
  func.func @_linear_kernel(%arg0: i32, %arg1: i32, %arg2: memref<8x32xf32, #tpu.memory_space<vmem>>, %arg3: memref<16x32xf32, #tpu.memory_space<vmem>>, %arg4: memref<1x16xf32, #tpu.memory_space<vmem>>, %arg5: memref<8x16xf32, #tpu.memory_space<vmem>>) attributes {dimension_semantics = [#tpu.dimension_semantics<parallel>, #tpu.dimension_semantics<parallel>], iteration_bounds = array<i64: 1, 1>, scalar_prefetch = 0 : i64, scratch_operands = 0 : i64, tpu.core_type = #tpu.core_type<tc>, window_params = [{transform_indices = @transform_0, window_bounds = array<i64: 8, 32>}, {transform_indices = @transform_1, window_bounds = array<i64: 16, 32>}, {transform_indices = @transform_2, window_bounds = array<i64: 1, 16>}, {transform_indices = @transform_3, window_bounds = array<i64: 8, 16>}]} {
    %c0 = arith.constant 0 : index
    %c0_0 = arith.constant 0 : index
    %0 = vector.load %arg2[%c0, %c0_0] : memref<8x32xf32, #tpu.memory_space<vmem>>, vector<8x32xf32>
    %c0_1 = arith.constant 0 : index
    %c0_2 = arith.constant 0 : index
    %1 = vector.load %arg3[%c0_1, %c0_2] : memref<16x32xf32, #tpu.memory_space<vmem>>, vector<16x32xf32>
    %cst = arith.constant dense<0.000000e+00> : vector<8x16xf32>
    %2 = tpu.matmul %0, %1, %cst {dimension_numbers = #tpu.dot_dimension_numbers<[1], [1], [0], [0], [0, 0, 1, 0], [], []>} : vector<8x32xf32>, vector<16x32xf32>, vector<8x16xf32> -> vector<8x16xf32>
    %c0_3 = arith.constant 0 : index
    %c0_4 = arith.constant 0 : index
    %3 = vector.load %arg4[%c0_3, %c0_4] : memref<1x16xf32, #tpu.memory_space<vmem>>, vector<1x16xf32>
    %4 = vector.broadcast %3 : vector<1x16xf32> to vector<8x16xf32>
    %5 = arith.addf %2, %4 : vector<8x16xf32>
    %c0_5 = arith.constant 0 : index
    %c0_6 = arith.constant 0 : index
    %6 = vector.load %arg5[%c0_5, %c0_6] : memref<8x16xf32, #tpu.memory_space<vmem>>, vector<8x16xf32>
    tpu.vector_store %arg5[%c0_5, %c0_6], %5 {strides = array<i32>} : memref<8x16xf32, #tpu.memory_space<vmem>>, vector<8x16xf32>,
    return
  }
  func.func @transform_0(%arg0: i32, %arg1: i32) -> (i32, i32) {
    %c0_i32 = arith.constant 0 : i32
    %c0_i32_0 = arith.constant 0 : i32
    return %arg1, %c0_i32 : i32, i32
  }
  func.func @transform_1(%arg0: i32, %arg1: i32) -> (i32, i32) {
    %c0_i32 = arith.constant 0 : i32
    %c0_i32_0 = arith.constant 0 : i32
    return %arg0, %c0_i32 : i32, i32
  }
  func.func @transform_2(%arg0: i32, %arg1: i32) -> (i32, i32) {
    %c0_i32 = arith.constant 0 : i32
    %c0_i32_0 = arith.constant 0 : i32
    return %c0_i32, %arg0 : i32, i32
  }
  func.func @transform_3(%arg0: i32, %arg1: i32) -> (i32, i32) {
    %c0_i32 = arith.constant 0 : i32
    return %arg1, %arg0 : i32, i32
  }
}

</mosaic_0001>

<bundles_post_ra>
// kernel: tpu_custom_call.1
= control target key start
LH: loop header
LB: loop body
LE: loop exit
PB: predicated region body
PF: predicated region fallthrough
CT: control target
= control target key end

     0   :  { %8 = vsyncpa [#allocation3], 0  ;;  %s226_s0 = inlined_call_operand.hbm [shape: f32[8,32], index: 0, kind: input, shape index: {}]   ;;  %s227_s1 = inlined_call_operand.hbm [shape: f32[16,32], index: 1, kind: input, shape index: {}]   ;;  %s228_s2 = inlined_call_operand.vmem [shape: f32[1,16], index: 2, kind: input, shape index: {}]   ;;  %s229_s3 = inlined_call_operand.hbm [shape: f32[8,16], index: 3, kind: output, shape index: {}]  }
   0x1   :  { %9 = vsyncpa [#allocation6], 0 }
   0x2   :  { %10 = vsyncpa [#allocation4], 0  ;;  %s16_s14 = sshll.u32 %s226_s0, 4  ;;  %s189_s15 = smov [#allocation2]   ;;  %s17_s14 = int_to_ptr.hbm [resolvable:$true] %s16_s14 }
   0x3   :  { %s18_s16 = sshll.u32 %s189_s15, 4  ;;  %s26_s19 = sshll.u32 %s227_s1, 4  ;;  %s19_s16 = int_to_ptr.vmem [resolvable:$true] %s18_s16  ;;  %s27_s19 = int_to_ptr.hbm [resolvable:$true] %s26_s19 }
   0x4   :  { %21 = dma.hbm_to_vmem [thread:$0]  %s17_s14, 128, %s19_s16, [#allocation3]  }
   0x5   :  { %s190_s20 = smov [#allocation5]   ;;  %s191_s22 = smov 128  }
   0x6   :  { %s28_s21 = sshll.u32 %s190_s20, 4  ;;  %s192_s23 = smov 8   ;;  %s29_s21 = int_to_ptr.vmem [resolvable:$true] %s28_s21 }
   0x7   :  { %34 = dma.hbm_to_vmem [thread:$0]  %s27_s19, 256, %s29_s21, [#allocation6], %s191_s22, %s191_s22, %s192_s23  }
   0x8   :  { %183 = dma.done.wait [#allocation3], 128  }
   0x9   :  { %184 = vsyncadd [#allocation3], 4294967168 }
   0xa   :  { %185 = dma.done.wait [#allocation6], 256  }
   0xb   :  { %186 = vsyncadd [#allocation6], 4294967040  ;;  %vm52_vm0 = vcmask 261120   ;;  %v47_v0 = vld [vmem:[#allocation5 + $0x8] sm:$0xff]  ;;  %v46_v1 = vld [vmem:[#allocation5] sm:$0xff]  ;;  %s193_s24 = smov [#allocation7]  }
   0xc   :  { %102 = vmatpush.xpose.msk.msra.mxu0 %vm52_vm0, %v47_v0  ;;  %v45_v2 = vld [vmem:[#allocation2] sm:$0xff]  ;;  %s89_s25 = sshll.u32 %s193_s24, 4  ;;  %s91_s28 = sshll.u32 %s229_s3, 4  ;;  %vm82_vm1 = vcmask 130048   ;;  %s90_s25 = int_to_ptr.vmem [resolvable:$true] %s89_s25  ;;  %s92_s28 = int_to_ptr.hbm [resolvable:$true] %s91_s28 }
   0xd   :  { %v110_v3 = vld [vmem:[%s228_s2] ss:$0 sm:$0xff] }
  0x10   :  { %103 = vmatpush.xpose.msk.msra.mxu0 %vm52_vm0, %v46_v1 }
  0x13   :  { %104 = vmatmul.msk.f32.vlgmr.msra.gmra.mxu0 %vm52_vm0, %v45_v2 }
  0x90   :  { %v79_v4 = vpop.f32.mrf.mxu0 }
  0x91   :  { %v80_v5 = vadd.f32 %v110_v3, %v79_v4 }
  0x93   :  { %83 = vst.msk [vmem:[#allocation7] sm:$0xff] %vm82_vm1, %v80_v5 }
  0x94   :  { %94 = dma.vmem_to_hbm [thread:$0]  %s90_s25, 128, %s92_s28, [#allocation4]  }
  0x95   :  { %187 = dma.done.wait [#allocation4], 128  }
  0x96   :  { %188 = vsyncadd [#allocation4], 4294967168 }
  0x97   :  { %99 = vsyncpa [#allocation3], 1 }
  0x98   :  { %100 = vsyncpa [#allocation6], 1 }
  0x99   :  { %101 = vsyncpa [#allocation4], 1 }

</bundles_post_ra>
